<compile_context>
chip_gen: v7x
topology: tpu7x:2x2x1
jax: 0.10.0
libtpu: 0.0.40
codegen_flags: <defaults>
</compile_context>

<pallas_src>
import functools

import jax
import jax.numpy as jnp
from jax.experimental import pallas as pl
from jax.experimental.pallas import tpu as pltpu

_EPS = 1e-5


def _bn_affine(p):
    gamma, beta, mean, var = p
    s = gamma / jnp.sqrt(var + _EPS)
    return s, beta - mean * s


def _round_up(x, m):
    return (x + m - 1) // m * m


def _st_gcn_kernel(xa_ref, x_ref, wg_ref, ind_ref, wb_ref, wt_ref, b2_ref,
                   wr_ref, br_ref, o_ref, *, node_v, pad, tv_real):
    """One batch-block per grid step; everything lane-dense (minor dim = TVp)."""
    nb, cout, tvp = o_ref.shape          # (batch_block, C_out, TVp)
    kt = wt_ref.shape[0]

    # ---- constants for this grid step (hoisted out of the batch loop) ----
    wg = wg_ref[...]                     # (C_out, K*C_in)  bf16, BN1 scale folded
    wr = wr_ref[...]                     # (C_out, C_in)    bf16, BNr scale folded
    b2 = b2_ref[...]                     # (C_out, 1)       f32 (conv bias + BN2 shift)
    br = br_ref[...]                     # (C_out, 1)       f32 (conv bias + BNr shift)
    # V-periodic GCN bias (graph bias + BN1 shift) rebuilt lane-dense from a tiny
    # (C_out, V+1) x (V+1, TVp) f32 matmul — replaces the old (C_out, T*V) constant.
    bias1 = jnp.dot(wb_ref[...], ind_ref[...], preferred_element_type=jnp.float32)
    lane = jax.lax.broadcasted_iota(jnp.int32, (cout, tvp), 1)

    # Small (<=4) static batch block -> unrolled; larger blocks are capped in the
    # wrapper so live ranges of the f32 temporaries stay bounded.
    for b in range(nb):
        # ---- GCN 1x1 conv (BN1 folded) + ReLU: one lane-dense MXU matmul ----
        g = jnp.dot(wg, xa_ref[b], preferred_element_type=jnp.float32) + bias1
        h = jnp.maximum(g, 0.0)          # (C_out, TVp) f32; zero in the padded tail

        # ---- temporal (kt,1) conv, BN2 folded: kt lane-rolled matmuls ----
        # Shifted windows live in registers (pltpu.roll on the XLU slot + a
        # boundary mask) instead of lane-unaligned VMEM scratch reads.
        u = None
        for dt in range(kt):
            shift = (pad - dt) * node_v              # static lane shift
            if shift == 0:
                win = h
            else:
                win = pltpu.roll(h, shift=shift % tvp, axis=1)
                if shift > 0:                        # zero wrapped leading time steps
                    win = jnp.where(lane >= shift, win, 0.0)
                else:                                # zero wrapped / out-of-range tail
                    win = jnp.where(lane < tv_real + shift, win, 0.0)
            tap = jnp.dot(wt_ref[dt], win.astype(jnp.bfloat16),
                          preferred_element_type=jnp.float32)
            u = tap if u is None else u + tap        # first tap initializes the acc
        u = u + b2

        # ---- residual branch: 1x1 conv, BNr folded ----
        r = jnp.dot(wr, x_ref[b], preferred_element_type=jnp.float32) + br

        # Module order: relu(tcn(gcn(x))) + residual(x).
        o_ref[b] = (jnp.maximum(u, 0.0) + r).astype(o_ref.dtype)


@functools.partial(jax.jit, static_argnames=("kernel_size", "batch_block", "out_dtype"))
def st_gcn_forward(x, A, params, *, kernel_size=(3, 3), batch_block=None,
                   out_dtype=jnp.float32):
    """x: (N, C_in, T, V); A: (K, V, V).  Returns (out (N, C_out, T, V), A)."""
    kt, K = kernel_size
    pad = (kt - 1) // 2
    N, C_in, T, V = x.shape
    C_out = params["wt"].shape[0]
    TV = T * V
    TVp = _round_up(TV, 128)             # vreg-aligned lane-minor dim
    f32, bf16 = jnp.float32, jnp.bfloat16

    s1, h1 = _bn_affine(params["bn1"])
    s2, h2 = _bn_affine(params["bn2"])
    sr, hr = _bn_affine(params["bnr"])

    x32 = x.astype(f32)
    A32 = A.astype(f32)

    # ---------- GCN weights: fold BN1 scale, columns ordered (k, c_in) ----------
    wg = params["wg"].reshape(K, C_out, C_in)
    wg_mat = (s1[None, :, None] * wg).transpose(1, 0, 2).reshape(C_out, K * C_in)

    # Graph-aggregated input xa[n, k*C_in+c, t*V+w] = sum_v x[n,c,t,v] * A[k,v,w].
    # The only V-minor step; hoisted to one XLA batched GEMM with the bf16 cast fused.
    xa = jnp.einsum("nctv,kvw->nkctw", x32, A32).reshape(N, K * C_in, TV).astype(bf16)

    # GCN bias = sum_k b_k (x) colsum(A_k), plus BN1 affine, factored as a
    # (C_out, V+1) matrix against a (V+1, TVp) one-hot node indicator (last row =
    # ones for the lane-constant BN1 shift); padded-tail columns are zeroed so the
    # activation stays exactly zero past the real T*V lanes.
    colsum = A32.sum(axis=1)                                            # (K, V)
    bias_g = jnp.einsum("kc,kw->cw", params["bg"].reshape(K, C_out), colsum)
    wb = jnp.concatenate([s1[:, None] * bias_g, h1[:, None]], axis=1)   # (C_out, V+1)
    lane_idx = jnp.arange(TVp)
    valid = (lane_idx < TV).astype(f32)
    node_1hot = (lane_idx[None, :] % V == jnp.arange(V)[:, None]).astype(f32) * valid[None, :]
    ind = jnp.concatenate([node_1hot, valid[None, :]], axis=0)          # (V+1, TVp)

    # ---------- temporal conv: fold BN2 into weights/bias ----------
    wt_k = (s2[:, None, None] * params["wt"]).transpose(2, 0, 1)        # (kt, C_out, C_out)
    b2 = (s2 * params["bt"] + h2)[:, None]                              # (C_out, 1)

    # ---------- residual 1x1 conv: fold BNr ----------
    wr_mat = sr[:, None] * params["wr"]                                 # (C_out, C_in)
    br2 = (sr * params["br"] + hr)[:, None]                             # (C_out, 1)

    # Lane-dense residual input (free reshape), zero-padded to TVp.
    x_ld = x32.reshape(N, C_in, TV).astype(bf16)
    if TVp != TV:
        xa = jnp.pad(xa, ((0, 0), (0, 0), (0, TVp - TV)))
        x_ld = jnp.pad(x_ld, ((0, 0), (0, 0), (0, TVp - TV)))

    # ---------- VMEM-aware batch-block selection + explicit VMEM limit ----------
    out_bytes = jnp.dtype(out_dtype).itemsize
    slab = 2 * (K * C_in * TVp * 2 + C_in * TVp * 2 + C_out * TVp * out_bytes)  # dbl-buffered IO
    slab += 6 * C_out * TVp * 4                                                  # f32 temporaries
    const_b = 2 * (wg_mat.size * 2 + wt_k.size * 2 + wr_mat.size * 2
                   + wb.size * 4 + ind.size * 4 + 2 * C_out * 4) + C_out * TVp * 4
    budget = 48 << 20                    # leaves headroom inside v7x's 64 MiB physical VMEM
    if batch_block is None:
        cands = [nb for nb in range(1, min(N, 4) + 1)      # cap 4: static unroll stays cheap
                 if N % nb == 0 and nb * slab + const_b <= budget]
        cands = cands or [1]
        multi = [nb for nb in cands if N // nb >= 2]       # keep grid >= 2 for v7x megacore
        batch_block = max(multi) if multi else max(cands)
    nb = batch_block
    assert N % nb == 0
    vmem_limit = int(min(64 << 20, max(32 << 20, nb * slab + const_b + (8 << 20))))

    flops = 2 * N * TVp * (C_out * K * C_in + kt * C_out * C_out + C_out * C_in)
    bytes_accessed = xa.size * 2 + x_ld.size * 2 + N * C_out * TVp * out_bytes + const_b // 2
    cost = pl.CostEstimate(flops=int(flops), transcendentals=0,
                           bytes_accessed=int(bytes_accessed))

    def full(shape):
        zero = (0,) * len(shape)
        return pl.BlockSpec(shape, lambda n: zero)

    kernel = functools.partial(_st_gcn_kernel, node_v=V, pad=pad, tv_real=TV)

    out_flat = pl.pallas_call(
        kernel,
        out_shape=jax.ShapeDtypeStruct((N, C_out, TVp), out_dtype),
        grid_spec=pltpu.PrefetchScalarGridSpec(
            num_scalar_prefetch=0,
            grid=(N // nb,),
            in_specs=[
                pl.BlockSpec((nb, K * C_in, TVp), lambda n: (n, 0, 0)),  # xa (bf16)
                pl.BlockSpec((nb, C_in, TVp), lambda n: (n, 0, 0)),      # x  (bf16, residual)
                full((C_out, K * C_in)),                                 # gcn weights (folded)
                full((V + 1, TVp)),                                      # node indicator (f32)
                full((C_out, V + 1)),                                    # gcn bias factor (f32)
                full((kt, C_out, C_out)),                                # temporal taps (folded)
                full((C_out, 1)),                                        # temporal bias + BN2
                full((C_out, C_in)),                                     # residual weights (folded)
                full((C_out, 1)),                                        # residual bias + BNr
            ],
            out_specs=pl.BlockSpec((nb, C_out, TVp), lambda n: (n, 0, 0)),
        ),
        compiler_params=pltpu.CompilerParams(
            dimension_semantics=("parallel",),
            vmem_limit_bytes=vmem_limit),
        cost_estimate=cost,
    )(xa, x_ld, wg_mat.astype(bf16), ind.astype(f32), wb.astype(f32),
      wt_k.astype(bf16), b2.astype(f32), wr_mat.astype(bf16), br2.astype(f32))

    out = out_flat[:, :, :TV].reshape(N, C_out, T, V)
    return out, A


def st_gcn_reference(x, A, params, *, kernel_size=(3, 3)):
    """Pure-JAX f32 reference with the natural (PyTorch-like) formulation."""
    kt, K = kernel_size
    pad = (kt - 1) // 2
    N, C_in, T, V = x.shape
    C_out = params["wt"].shape[0]

    def bn(y, p):
        s, sh = _bn_affine(p)
        return y * s[None, :, None, None] + sh[None, :, None, None]

    # GCN: 1x1 conv then einsum('nkctv,kvw->nctw')
    y = jnp.einsum("oc,nctv->notv", params["wg"], x) + params["bg"][None, :, None, None]
    y = y.reshape(N, K, C_out, T, V)
    g = jnp.einsum("nkctv,kvw->nctw", y, A)
    # TCN: BN -> ReLU -> (kt,1) conv -> BN
    h = jax.nn.relu(bn(g, params["bn1"]))
    hp = jnp.pad(h, ((0, 0), (0, 0), (pad, pad), (0, 0)))
    t = sum(jnp.einsum("oc,nctv->notv", params["wt"][:, :, dt], hp[:, :, dt:dt + T, :])
            for dt in range(kt)) + params["bt"][None, :, None, None]
    t = jax.nn.relu(bn(t, params["bn2"]))
    # residual (Conv1x1 + BN, since in_channels != out_channels)
    r = bn(jnp.einsum("oc,nctv->notv", params["wr"], x) + params["br"][None, :, None, None],
           params["bnr"])
    return t + r, A


if __name__ == "__main__":
    N, C_in, C_out, T, V = 2, 4, 8, 16, 16
    kt, K = 3, 3                                   # kernel_size = (temporal, spatial)

    key = jax.random.PRNGKey(0)
    ks = jax.random.split(key, 18)

    def bn_params(i):
        return (1.0 + 0.1 * jax.random.normal(ks[i + 0], (C_out,), jnp.float32),   # gamma
                0.1 * jax.random.normal(ks[i + 1], (C_out,), jnp.float32),          # beta
                0.1 * jax.random.normal(ks[i + 2], (C_out,), jnp.float32),          # running mean
                1.0 + 0.5 * jax.random.uniform(ks[i + 3], (C_out,), jnp.float32))   # running var

    params = {
        "wg": 0.2 * jax.random.normal(ks[0], (K * C_out, C_in), jnp.float32),   # gcn 1x1 conv
        "bg": 0.05 * jax.random.normal(ks[1], (K * C_out,), jnp.float32),
        "wt": 0.2 * jax.random.normal(ks[2], (C_out, C_out, kt), jnp.float32),  # temporal conv (kt,1)
        "bt": 0.05 * jax.random.normal(ks[3], (C_out,), jnp.float32),
        "wr": 0.2 * jax.random.normal(ks[4], (C_out, C_in), jnp.float32),       # residual 1x1 conv
        "br": 0.05 * jax.random.normal(ks[5], (C_out,), jnp.float32),
        "bn1": bn_params(6),
        "bn2": bn_params(10),
        "bnr": bn_params(14),
    }

    x = jax.random.normal(ks[16], (N, C_in, T, V), jnp.float32)
    A = jax.random.uniform(ks[17], (K, V, V), jnp.float32) / V

    out, A_out = jax.block_until_ready(st_gcn_forward(x, A, params, kernel_size=(kt, K)))
    ref, _ = st_gcn_reference(x, A, params, kernel_size=(kt, K))

    assert out.shape == (N, C_out, T, V), out.shape
    assert A_out.shape == (K, V, V)
    max_err = float(jnp.max(jnp.abs(out - ref)))
    # bf16 MXU inputs with f32 accumulation: ~1e-3..1e-2 error vs f32 is expected
    # and intentional (inference-grade); tolerance reflects that.
    assert jnp.allclose(out, ref, atol=5e-2, rtol=5e-2), max_err
    print("KERNEL_OK")
</pallas_src>

<mosaic_0001>
module attributes {stable_mosaic.version = 11 : i64} {
  func.func @_st_gcn_kernel(%arg0: i32, %arg1: memref<1x12x256xbf16, #tpu.memory_space<vmem>>, %arg2: memref<1x4x256xbf16, #tpu.memory_space<vmem>>, %arg3: memref<8x12xbf16, #tpu.memory_space<vmem>>, %arg4: memref<17x256xf32, #tpu.memory_space<vmem>>, %arg5: memref<8x17xf32, #tpu.memory_space<vmem>>, %arg6: memref<3x8x8xbf16, #tpu.memory_space<vmem>>, %arg7: memref<8x1xf32, #tpu.memory_space<vmem>>, %arg8: memref<8x4xbf16, #tpu.memory_space<vmem>>, %arg9: memref<8x1xf32, #tpu.memory_space<vmem>>, %arg10: memref<1x8x256xf32, #tpu.memory_space<vmem>>) attributes {dimension_semantics = [#tpu.dimension_semantics<parallel>], iteration_bounds = array<i64: 2>, scalar_prefetch = 0 : i64, scratch_operands = 0 : i64, tpu.core_type = #tpu.core_type<tc>, window_params = [{transform_indices = @transform_0, window_bounds = array<i64: 1, 12, 256>}, {transform_indices = @transform_1, window_bounds = array<i64: 1, 4, 256>}, {pipeline_mode = #tpu.pipeline_mode<synchronous>, transform_indices = @transform_2, window_bounds = array<i64: 8, 12>}, {pipeline_mode = #tpu.pipeline_mode<synchronous>, transform_indices = @transform_3, window_bounds = array<i64: 17, 256>}, {pipeline_mode = #tpu.pipeline_mode<synchronous>, transform_indices = @transform_4, window_bounds = array<i64: 8, 17>}, {pipeline_mode = #tpu.pipeline_mode<synchronous>, transform_indices = @transform_5, window_bounds = array<i64: 3, 8, 8>}, {pipeline_mode = #tpu.pipeline_mode<synchronous>, transform_indices = @transform_6, window_bounds = array<i64: 8, 1>}, {pipeline_mode = #tpu.pipeline_mode<synchronous>, transform_indices = @transform_7, window_bounds = array<i64: 8, 4>}, {pipeline_mode = #tpu.pipeline_mode<synchronous>, transform_indices = @transform_8, window_bounds = array<i64: 8, 1>}, {transform_indices = @transform_9, window_bounds = array<i64: 1, 8, 256>}]} {
    %c0 = arith.constant 0 : index
    %c0_0 = arith.constant 0 : index
    %0 = vector.load %arg3[%c0, %c0_0] : memref<8x12xbf16, #tpu.memory_space<vmem>>, vector<8x12xbf16>
    %c0_1 = arith.constant 0 : index
    %c0_2 = arith.constant 0 : index
    %1 = vector.load %arg8[%c0_1, %c0_2] : memref<8x4xbf16, #tpu.memory_space<vmem>>, vector<8x4xbf16>
    %c0_3 = arith.constant 0 : index
    %c0_4 = arith.constant 0 : index
    %2 = vector.load %arg7[%c0_3, %c0_4] : memref<8x1xf32, #tpu.memory_space<vmem>>, vector<8x1xf32>
    %c0_5 = arith.constant 0 : index
    %c0_6 = arith.constant 0 : index
    %3 = vector.load %arg9[%c0_5, %c0_6] : memref<8x1xf32, #tpu.memory_space<vmem>>, vector<8x1xf32>
    %c0_7 = arith.constant 0 : index
    %c0_8 = arith.constant 0 : index
    %4 = vector.load %arg5[%c0_7, %c0_8] : memref<8x17xf32, #tpu.memory_space<vmem>>, vector<8x17xf32>
    %c0_9 = arith.constant 0 : index
    %c0_10 = arith.constant 0 : index
    %5 = vector.load %arg4[%c0_9, %c0_10] : memref<17x256xf32, #tpu.memory_space<vmem>>, vector<17x256xf32>
    %cst = arith.constant dense<0.000000e+00> : vector<8x256xf32>
    %6 = tpu.matmul %4, %5, %cst {dimension_numbers = #tpu.dot_dimension_numbers<[1], [0], [0], [1], [0, 0, 1, 1], [], []>} : vector<8x17xf32>, vector<17x256xf32>, vector<8x256xf32> -> vector<8x256xf32>
    %7 = tpu.iota {dimensions = array<i32: 1>} : vector<8x256xi32>
    %c0_11 = arith.constant 0 : index
    %c0_12 = arith.constant 0 : index
    %c0_13 = arith.constant 0 : index
    %8 = vector.load %arg1[%c0_11, %c0_12, %c0_13] : memref<1x12x256xbf16, #tpu.memory_space<vmem>>, vector<1x12x256xbf16>
    %9 = vector.shape_cast %8 : vector<1x12x256xbf16> to vector<12x256xbf16>
    %cst_14 = arith.constant dense<0.000000e+00> : vector<8x256xf32>
    %10 = tpu.matmul %0, %9, %cst_14 {dimension_numbers = #tpu.dot_dimension_numbers<[1], [0], [0], [1], [0, 0, 1, 1], [], []>} : vector<8x12xbf16>, vector<12x256xbf16>, vector<8x256xf32> -> vector<8x256xf32>
    %11 = arith.addf %10, %6 : vector<8x256xf32>
    %cst_15 = arith.constant 0.000000e+00 : f32
    %12 = vector.broadcast %cst_15 : f32 to vector<8x256xf32>
    %13 = arith.maximumf %11, %12 : vector<8x256xf32>
    %c16_i32 = arith.constant 16 : i32
    %14 = tpu.dynamic_rotate %13 by %c16_i32 dim 1 : vector<8x256xf32>, i32 -> vector<8x256xf32>
    %c16_i32_16 = arith.constant 16 : i32
    %15 = vector.broadcast %c16_i32_16 : i32 to vector<8x256xi32>
    %16 = arith.cmpi sge, %7, %15 : vector<8x256xi32>
    %cst_17 = arith.constant 0.000000e+00 : f32
    %17 = vector.broadcast %cst_17 : f32 to vector<8x256xf32>
    %18 = arith.select %16, %14, %17 : vector<8x256xi1>, vector<8x256xf32>
    %c0_18 = arith.constant 0 : index
    %c0_19 = arith.constant 0 : index
    %c0_20 = arith.constant 0 : index
    %19 = vector.load %arg6[%c0_18, %c0_19, %c0_20] : memref<3x8x8xbf16, #tpu.memory_space<vmem>>, vector<1x8x8xbf16>
    %20 = vector.shape_cast %19 : vector<1x8x8xbf16> to vector<8x8xbf16>
    %21 = arith.truncf %18 : vector<8x256xf32> to vector<8x256xbf16>
    %cst_21 = arith.constant dense<0.000000e+00> : vector<8x256xf32>
    %22 = tpu.matmul %20, %21, %cst_21 {dimension_numbers = #tpu.dot_dimension_numbers<[1], [0], [0], [1], [0, 0, 1, 1], [], []>} : vector<8x8xbf16>, vector<8x256xbf16>, vector<8x256xf32> -> vector<8x256xf32>
    %c1 = arith.constant 1 : index
    %c0_22 = arith.constant 0 : index
    %c0_23 = arith.constant 0 : index
    %23 = vector.load %arg6[%c1, %c0_22, %c0_23] : memref<3x8x8xbf16, #tpu.memory_space<vmem>>, vector<1x8x8xbf16>
    %24 = vector.shape_cast %23 : vector<1x8x8xbf16> to vector<8x8xbf16>
    %25 = arith.truncf %13 : vector<8x256xf32> to vector<8x256xbf16>
    %cst_24 = arith.constant dense<0.000000e+00> : vector<8x256xf32>
    %26 = tpu.matmul %24, %25, %cst_24 {dimension_numbers = #tpu.dot_dimension_numbers<[1], [0], [0], [1], [0, 0, 1, 1], [], []>} : vector<8x8xbf16>, vector<8x256xbf16>, vector<8x256xf32> -> vector<8x256xf32>
    %27 = arith.addf %22, %26 : vector<8x256xf32>
    %c240_i32 = arith.constant 240 : i32
    %28 = tpu.dynamic_rotate %13 by %c240_i32 dim 1 : vector<8x256xf32>, i32 -> vector<8x256xf32>
    %c240_i32_25 = arith.constant 240 : i32
    %29 = vector.broadcast %c240_i32_25 : i32 to vector<8x256xi32>
    %30 = arith.cmpi slt, %7, %29 : vector<8x256xi32>
    %cst_26 = arith.constant 0.000000e+00 : f32
    %31 = vector.broadcast %cst_26 : f32 to vector<8x256xf32>
    %32 = arith.select %30, %28, %31 : vector<8x256xi1>, vector<8x256xf32>
    %c2 = arith.constant 2 : index
    %c0_27 = arith.constant 0 : index
    %c0_28 = arith.constant 0 : index
    %33 = vector.load %arg6[%c2, %c0_27, %c0_28] : memref<3x8x8xbf16, #tpu.memory_space<vmem>>, vector<1x8x8xbf16>
    %34 = vector.shape_cast %33 : vector<1x8x8xbf16> to vector<8x8xbf16>
    %35 = arith.truncf %32 : vector<8x256xf32> to vector<8x256xbf16>
    %cst_29 = arith.constant dense<0.000000e+00> : vector<8x256xf32>
    %36 = tpu.matmul %34, %35, %cst_29 {dimension_numbers = #tpu.dot_dimension_numbers<[1], [0], [0], [1], [0, 0, 1, 1], [], []>} : vector<8x8xbf16>, vector<8x256xbf16>, vector<8x256xf32> -> vector<8x256xf32>
    %37 = arith.addf %27, %36 : vector<8x256xf32>
    %38 = vector.broadcast %2 : vector<8x1xf32> to vector<8x256xf32>
    %39 = arith.addf %37, %38 : vector<8x256xf32>
    %c0_30 = arith.constant 0 : index
    %c0_31 = arith.constant 0 : index
    %c0_32 = arith.constant 0 : index
    %40 = vector.load %arg2[%c0_30, %c0_31, %c0_32] : memref<1x4x256xbf16, #tpu.memory_space<vmem>>, vector<1x4x256xbf16>
    %41 = vector.shape_cast %40 : vector<1x4x256xbf16> to vector<4x256xbf16>
    %cst_33 = arith.constant dense<0.000000e+00> : vector<8x256xf32>
    %42 = tpu.matmul %1, %41, %cst_33 {dimension_numbers = #tpu.dot_dimension_numbers<[1], [0], [0], [1], [0, 0, 1, 1], [], []>} : vector<8x4xbf16>, vector<4x256xbf16>, vector<8x256xf32> -> vector<8x256xf32>
    %43 = vector.broadcast %3 : vector<8x1xf32> to vector<8x256xf32>
    %44 = arith.addf %42, %43 : vector<8x256xf32>
    %cst_34 = arith.constant 0.000000e+00 : f32
    %45 = vector.broadcast %cst_34 : f32 to vector<8x256xf32>
    %46 = arith.maximumf %39, %45 : vector<8x256xf32>
    %47 = arith.addf %46, %44 : vector<8x256xf32>
    %c0_35 = arith.constant 0 : index
    %c0_36 = arith.constant 0 : index
    %c0_37 = arith.constant 0 : index
    %48 = vector.load %arg10[%c0_35, %c0_36, %c0_37] : memref<1x8x256xf32, #tpu.memory_space<vmem>>, vector<1x8x256xf32>
    %49 = vector.shape_cast %48 : vector<1x8x256xf32> to vector<8x256xf32>
    %50 = vector.shape_cast %47 : vector<8x256xf32> to vector<1x8x256xf32>
    tpu.vector_store %arg10[%c0_35, %c0_36, %c0_37], %50 {strides = array<i32>} : memref<1x8x256xf32, #tpu.memory_space<vmem>>, vector<1x8x256xf32>,
    return
  }
  func.func @transform_0(%arg0: i32) -> (i32, i32, i32) {
    %c0_i32 = arith.constant 0 : i32
    %c0_i32_0 = arith.constant 0 : i32
    %c0_i32_1 = arith.constant 0 : i32
    return %arg0, %c0_i32, %c0_i32_0 : i32, i32, i32
  }
  func.func @transform_1(%arg0: i32) -> (i32, i32, i32) {
    %c0_i32 = arith.constant 0 : i32
    %c0_i32_0 = arith.constant 0 : i32
    %c0_i32_1 = arith.constant 0 : i32
    return %arg0, %c0_i32, %c0_i32_0 : i32, i32, i32
  }
  func.func @transform_2(%arg0: i32) -> (i32, i32) {
    %c0_i32 = arith.constant 0 : i32
    %c0_i32_0 = arith.constant 0 : i32
    %c0_i32_1 = arith.constant 0 : i32
    return %c0_i32, %c0_i32_0 : i32, i32
  }
  func.func @transform_3(%arg0: i32) -> (i32, i32) {
    %c0_i32 = arith.constant 0 : i32
    %c0_i32_0 = arith.constant 0 : i32
    %c0_i32_1 = arith.constant 0 : i32
    return %c0_i32, %c0_i32_0 : i32, i32
  }
  func.func @transform_4(%arg0: i32) -> (i32, i32) {
    %c0_i32 = arith.constant 0 : i32
    %c0_i32_0 = arith.constant 0 : i32
    %c0_i32_1 = arith.constant 0 : i32
    return %c0_i32, %c0_i32_0 : i32, i32
  }
  func.func @transform_5(%arg0: i32) -> (i32, i32, i32) {
    %c0_i32 = arith.constant 0 : i32
    %c0_i32_0 = arith.constant 0 : i32
    %c0_i32_1 = arith.constant 0 : i32
    %c0_i32_2 = arith.constant 0 : i32
    return %c0_i32, %c0_i32_0, %c0_i32_1 : i32, i32, i32
  }
  func.func @transform_6(%arg0: i32) -> (i32, i32) {
    %c0_i32 = arith.constant 0 : i32
    %c0_i32_0 = arith.constant 0 : i32
    %c0_i32_1 = arith.constant 0 : i32
    return %c0_i32, %c0_i32_0 : i32, i32
  }
  func.func @transform_7(%arg0: i32) -> (i32, i32) {
    %c0_i32 = arith.constant 0 : i32
    %c0_i32_0 = arith.constant 0 : i32
    %c0_i32_1 = arith.constant 0 : i32
    return %c0_i32, %c0_i32_0 : i32, i32
  }
  func.func @transform_8(%arg0: i32) -> (i32, i32) {
    %c0_i32 = arith.constant 0 : i32
    %c0_i32_0 = arith.constant 0 : i32
    %c0_i32_1 = arith.constant 0 : i32
    return %c0_i32, %c0_i32_0 : i32, i32
  }
  func.func @transform_9(%arg0: i32) -> (i32, i32, i32) {
    %c0_i32 = arith.constant 0 : i32
    %c0_i32_0 = arith.constant 0 : i32
    %c0_i32_1 = arith.constant 0 : i32
    return %arg0, %c0_i32, %c0_i32_0 : i32, i32, i32
  }
}

</mosaic_0001>

<bundles_post_ra>
// kernel: st_gcn_forward.1
= control target key start
LH: loop header
LB: loop body
LE: loop exit
PB: predicated region body
PF: predicated region fallthrough
CT: control target
= control target key end

     0   :  { %s975_s30 = smov 0   ;;  %s1063_s0 = inlined_call_operand.vmem [shape: bf16[2,12,256], index: 0, kind: input, shape index: {}]   ;;  %s1064_s1 = inlined_call_operand.vmem [shape: bf16[2,4,256], index: 1, kind: input, shape index: {}]   ;;  %s1065_s2 = inlined_call_operand.vmem [shape: bf16[8,12], index: 2, kind: input, shape index: {}]   ;;  %s1066_s3 = inlined_call_operand.vmem [shape: f32[17,256], index: 3, kind: input, shape index: {}]   ;;  %s1067_s4 = inlined_call_operand.vmem [shape: f32[8,17], index: 4, kind: input, shape index: {}]   ;;  %s1068_s5 = inlined_call_operand.vmem [shape: bf16[3,8,8], index: 5, kind: input, shape index: {}]   ;;  %s1069_s6 = inlined_call_operand.vmem [shape: f32[8,1], index: 6, kind: input, shape index: {}]   ;;  %s1070_s7 = inlined_call_operand.vmem [shape: bf16[8,4], index: 7, kind: input, shape index: {}]   ;;  %s1071_s8 = inlined_call_operand.vmem [shape: f32[8,1], index: 8, kind: input, shape index: {}]   ;;  %s1072_s9 = inlined_call_operand.vmem [shape: f32[2,8,256], index: 9, kind: output, shape index: {}]  }
   0x1 LB: > { %s848_s10 = sadd.s32 4294967295, %s919_s30   ;;  %p852_p0 = scmp.ge.s32.totalorder %s919_s30, 1  ;;  %s919_s30 = sphi %s975_s30, %s19_s30  }
   0x2   : > { %p297_p1 = scmp.lt.s32.totalorder %s919_s30, 3 }
   0x4   : > { %p298_p2 = pnand %p852_p0, %p297_p1 }
   0x5   : > { %v360_v0 = vld [vmem:[%s1066_s3 + $0x8] sm:$0xff] (!%p298_p2)  ;;  %v362_v1 = vld [vmem:[%s1066_s3 + $0x18] sm:$0xff] (!%p298_p2)  ;;  %v359_v2 = vld [vmem:[%s1066_s3] sm:$0xff] (!%p298_p2)  ;;  %p338_p3 = scmp.lt.s32.totalorder (!%p298_p2), %s848_s10, 1  ;;  %vm369_vm0 = vcmask (!%p298_p2), 1040384   ;;  %v921_v7 = vmov (!%p298_p2), 0.0   ;;  %v447_v32 = vlaneseq (!%p298_p2) }
   0x6   : > { %301 = sbr.rel (%p298_p2) target bundleno = 591 (0x24f), region = 56  ;;  %v882_v3 = vpack.c.bf16 (!%p298_p2), %v362_v1, %v360_v0  ;;  %v361_v4 = vld [vmem:[%s1066_s3 + $0x10] sm:$0xff] (!%p298_p2)  ;;  %v364_v6 = vld [vmem:[%s1066_s3 + $0x28] sm:$0x1] (!%p298_p2)  ;;  %440 = vmatprep.mubr.f32.mxu0 (!%p298_p2), %v921_v7  ;;  %v922_v8 = vmov (!%p298_p2), 0   ;;  %vm464_vm1 = vcmask (!%p298_p2), 1045504  }
   0x7   : > { %v884_v5 = vpack.c.bf16 (!%p298_p2), %v361_v4, %v359_v2  ;;  %503 = vmatprep.mubr.bf16.mxu1 (!%p298_p2), %v922_v8  ;;  %908 = vset.pattern.permute.xlu1 (!%p298_p2), %v922_v8  ;;  %v363_v9 = vld [vmem:[%s1066_s3 + $0x20] sm:$0x1] (!%p298_p2)  ;;  %vm365_vm2 = vcmask (!%p298_p2), 138240   ;;  %vm460_vm3 = vcmask (!%p298_p2), 97280   ;;  %vm536_vm4 = vcmask (!%p298_p2), 1043456   ;;  %s923_s12 = smov (!%p298_p2), 16  }
   0x8   : > { %883 = vmatprep.subr.bf16.mxu0 (!%p298_p2), %v882_v3  ;;  %v358_v10 = vld [vmem:[%s1067_s4] sm:$0xff] (!%p298_p2)  ;;  %909 = vset.pattern.permute.xlu0 (!%p298_p2), %v922_v8  ;;  %vm532_vm5 = vcmask (!%p298_p2), 64512   ;;  %s924_s15 = smov (!%p298_p2), 112   ;;  %v448_v33 = vand.u32 (!%p298_p2), 127, %v447_v32  ;;  %vm727_vm10 = vcmask (!%p298_p2), 1041408   ;;  %vm723_vm11 = vcmask (!%p298_p2), 31744  }
   0x9   : > { %885 = vmatpush1.bf16.msra.mxu0 (!%p298_p2), %v884_v5  ;;  %v354_v14 = vld [vmem:[%s1065_s2] sm:$0xf] (!%p298_p2)  ;;  %v866_v29 = vld [vmem:[%s1068_s5 + $0x4] sm:$0xf] (!%p298_p2)  ;;  %v871_v57 = vld [vmem:[%s1068_s5 + $0x8] sm:$0xf] (!%p298_p2) }
   0xa   : > { %859 = vmatprep.subr.msk.mxu0 (!%p298_p2), %vm369_vm0, %v364_v6  ;;  %v356_v30 = vld [vmem:[%s1069_s6] sm:$0xff] (!%p298_p2)  ;;  %vm518_vm6 = vcmp.lt.s32.totalorder (!%p298_p2), %v448_v33, 16  ;;  %v449_v35 = vadd.s32 (!%p298_p2), 128, %v448_v33  ;;  %vm521_vm7 = vcmp.ge.s32.totalorder (!%p298_p2), %v448_v33, 16  ;;  %vm638_vm8 = vcmp.lt.s32.totalorder (!%p298_p2), %v448_v33, 112 }
   0xb   : > { %703 = vperm.xlu1 (!%p298_p2), %908, %v356_v30   ;;  %v357_v31 = vld [vmem:[%s1071_s8] sm:$0xff] (!%p298_p2) }
   0xc   : > { %vm642_vm9 = vcmp.lt.s32.totalorder (!%p298_p2), %v449_v35, 240  ;;  %v525_v53 = vld [vmem:[%s1068_s5] sm:$0xf] (!%p298_p2) }
   0xd   : > { %s1074_s10 = smov (!%p338_p3, %s848_s10), 1  ;;  %860 = vmatpush1.msk.msra.mxu0 %vm369_vm0, %v363_v9  ;;  %v355_v58 = vld [vmem:[%s1070_s7] sm:$0xf] }
   0xe   : > { %s879_s21 = sshll.u32 %s1074_s10, 4  ;;  %861 = vmatmul.mubr.msk.f32.vlgmr.msra.gmra.mrb[0].mxu0 %vm365_vm2, %v358_v10  ;;  %s880_s20 = sshll.u32 %s1074_s10, 2 }
   0xf   : > { %s342_s24 = scalar_lea.vmem %s1063_s0, %s879_s21  ;;  %575 = vmatprep.mubr.bf16.mxu0 %v922_v8  ;;  %711 = vperm.xlu1 %908, %v357_v31   ;;  %s352_s14 = scalar_lea.vmem %s1072_s9, %s879_s21 }
  0x10   : > { %v910_v11 = vld [vmem:[%s342_s24 + $0x4] ss:$8 sps:$4 sm:$0x3f]   ;;  %v912_v12 = vld [vmem:[%s342_s24] ss:$8 sps:$4 sm:$0x3f]   ;;  %s347_s24 = scalar_lea.vmem %s1064_s1, %s880_s20 }
  0x11   : > { %864 = vmatprep.subr.msk.bf16.mxu1 %vm464_vm1, %v910_v11  ;;  %v466_v13 = vsel %vm464_vm1, %v912_v12, 0  ;;  %v874_v38 = vld.sshfl [vmem:[%s347_s24] sm:$0x33 pattern:$0x76325410] }
  0x12   : > { %472 = vmatpush1.bf16.msra.mxu1 %v466_v13  ;;  %v722_v47 = vcombine.high %v874_v38, %v874_v38  ;;  %v729_v55 = vsel %vm727_vm10, %v874_v38, 0 }
  0x15   : > { %865 = vmatmul.mubr.msk.bf16.vlgmr.msra.gmra.mrb[0].mxu1 %vm460_vm3, %v354_v14 }
  0x16   : > { %625 = vmatprep.mubr.bf16.mxu1 %v922_v8 }
  0x8a   : > { %v704_v3 = vpop.permute.xlu1 %703 }
  0x8e   : > { %v712_v14 = vpop.permute.xlu1 %711 }
  0xe1   : > { %v442_v15 = vpop.f32.mrb[0].mxu0 }
  0xe2   : > { %v444_v16 = vpop.f32.mrb[1].mxu0 }
  0xe8   : > { %v505_v17 = vpop.f32.mrb[0].mxu1 }
  0xe9   : > { %v506_v18 = vadd.f32 %v505_v17, %v442_v15  ;;  %v507_v19 = vpop.f32.mrb[1].mxu1 }
  0xea   : > { %v508_v20 = vadd.f32 %v507_v19, %v444_v16  ;;  %v509_v21 = vpop.f32.mrb[2].mxu1 }
  0xeb   : > { %v512_v22 = vmax.f32 %v506_v18, 0.0  ;;  %v510_v23 = vpop.f32.mrb[3].mxu1 }
  0xec   : > { %v513_v24 = vmax.f32 %v508_v20, 0.0 }
  0xed   : > { %v530_v25 = vpack.c.bf16 %v512_v22, %v512_v22 }
  0xee   : > { %v531_v26 = vpack.c.bf16 %v513_v24, %v513_v24  ;;  %v898_v27 = vpack.i.bf16 %v513_v24, %v512_v22 }
  0xef   : > { %v538_v28 = vsel %vm536_vm4, %v530_v25, 0 }
  0xf0   : > { %867 = vmatprep.subr.msk.bf16.mxu0 %vm536_vm4, %v531_v26  ;;  %899 = vrot.lane.b32.xlu0 %v898_v27, %s923_s12 }
  0xf1   : > { %544 = vmatpush1.bf16.msra.mxu0 %v538_v28 }
  0xf4   : > { %904 = vrot.lane.b32.xlu0 %v898_v27, %s924_s15  ;;  %868 = vmatmul.mubr.msk.bf16.vlgmr.msra.gmra.mrb[4].mxu0 %vm532_vm5, %v866_v29 }
  0xf5   : > { %690 = vmatprep.mubr.bf16.mxu0 %v922_v8 }
 0x162   : > { %v900_v34 = vpop.permute.xlu0 %899 }
 0x163   : > { %v902_v36 = vunpack.i.h.bf16 %v900_v34  ;;  %v901_v37 = vunpack.i.l.bf16 %v900_v34 }
 0x165   : > { %v519_v39 = vsel %vm518_vm6, %v901_v37, %v902_v36  ;;  %v520_v40 = vsel %vm518_vm6, %v902_v36, %v901_v37 }
 0x166   : > { %v527_v41 = vpack.c.bf16 %v519_v39, %v519_v39  ;;  %v905_v42 = vpop.permute.xlu0 %904  ;;  %v523_v43 = vsel %vm521_vm7, %v520_v40, 0.0 }
 0x167   : > { %v907_v44 = vunpack.i.h.bf16 %v905_v42  ;;  %v906_v45 = vunpack.i.l.bf16 %v905_v42  ;;  %v526_v46 = vpack.c.bf16 %v523_v43, %v523_v43 }
 0x168   : > { %869 = vmatprep.subr.msk.bf16.mxu1 %vm536_vm4, %v527_v41 }
 0x169   : > { %v639_v48 = vsel %vm638_vm8, %v906_v45, %v907_v44  ;;  %v640_v49 = vsel %vm638_vm8, %v907_v44, %v906_v45  ;;  %v588_v50 = vsel %vm536_vm4, %v526_v46, 0 }
 0x16a   : > { %v644_v51 = vsel %vm642_vm9, %v640_v49, 0.0  ;;  %v647_v52 = vpack.c.bf16 %v639_v48, %v639_v48  ;;  %594 = vmatpush1.bf16.msra.mxu1 %v588_v50 }
 0x16b   : > { %v648_v54 = vpack.c.bf16 %v644_v51, %v644_v51  ;;  %875 = vmatprep.subr.msk.bf16.mxu1 %vm727_vm10, %v722_v47 }
 0x16c   : > { %v653_v56 = vsel %vm536_vm4, %v647_v52, 0 }
 0x16d   : > { %870 = vmatmul.mubr.msk.bf16.vlgmr.msra.gmra.mrb[4].mxu1 %vm532_vm5, %v525_v53  ;;  %872 = vmatprep.subr.msk.bf16.mxu0 %vm536_vm4, %v648_v54 }
 0x16e   : > { %659 = vmatpush1.bf16.msra.mxu0 %v653_v56  ;;  %735 = vmatpush1.bf16.msra.mxu1 %v729_v55 }
 0x16f   : > { %766 = vmatprep.mubr.bf16.mxu1 %v922_v8 }
 0x171   : > { %873 = vmatmul.mubr.msk.bf16.vlgmr.msra.gmra.mrb[8].mxu0 %vm532_vm5, %v871_v57 }
 0x175   : > { %876 = vmatmul.mubr.msk.bf16.vlgmr.msra.gmra.mrb[8].mxu1 %vm723_vm11, %v355_v58 }
 0x1c7   : > { %v577_v59 = vpop.f32.mrb[4].mxu0 }
 0x1c8   : > { %v579_v60 = vpop.f32.mrb[5].mxu0 }
 0x1c9   : > { %v581_v61 = vpop.f32.mrb[6].mxu0 }
 0x1ca   : > { %v582_v62 = vpop.f32.mrb[7].mxu0 }
 0x240   : > { %v627_v63 = vpop.f32.mrb[4].mxu1 }
 0x241   : > { %v628_v0 = vadd.f32 %v627_v63, %v577_v59  ;;  %v629_v1 = vpop.f32.mrb[5].mxu1 }
 0x242   : > { %v630_v2 = vadd.f32 %v629_v1, %v579_v60  ;;  %v631_v4 = vpop.f32.mrb[6].mxu1 }
 0x243   : > { %v632_v5 = vpop.f32.mrb[7].mxu1 }
 0x244   : > { %v692_v6 = vpop.f32.mrb[8].mxu0 }
 0x245   : > { %v699_v7 = vadd.f32 %v692_v6, %v628_v0  ;;  %v694_v8 = vpop.f32.mrb[9].mxu0 }
 0x246   : > { %v700_v9 = vadd.f32 %v694_v8, %v630_v2  ;;  %v696_v10 = vpop.f32.mrb[10].mxu0 }
 0x247   : > { %v706_v11 = vadd.f32 %v704_v3, %v699_v7  ;;  %v697_v12 = vpop.f32.mrb[11].mxu0 }
 0x248   : > { %v707_v13 = vadd.f32 %v704_v3, %v700_v9  ;;  %v768_v15 = vpop.f32.mrb[8].mxu1 }
 0x249   : > { %v775_v16 = vmax.f32 %v706_v11, 0.0  ;;  %v769_v17 = vadd.f32 %v768_v15, %v712_v14  ;;  %v770_v18 = vpop.f32.mrb[9].mxu1 }
 0x24a   : > { %v776_v19 = vmax.f32 %v707_v13, 0.0  ;;  %v771_v20 = vadd.f32 %v770_v18, %v712_v14  ;;  %v772_v21 = vpop.f32.mrb[10].mxu1 }
 0x24b   : > { %v777_v22 = vadd.f32 %v775_v16, %v769_v17  ;;  %v773_v23 = vpop.f32.mrb[11].mxu1 }
 0x24c   : > { %v778_v24 = vadd.f32 %v776_v19, %v771_v20 }
 0x24d   : > { %779 = vst [vmem:[%s352_s14] sm:$0xff] %v777_v22 }
 0x24e   : > { %780 = vst [vmem:[%s352_s14 + $0x8] sm:$0xff] %v778_v24 }
 0x24f PF: > { %s19_s30 = sadd.s32 1, %s919_s30  }
 0x250   : > { %p16_p4 = scmp.ge.s32.totalorder %s19_s30, 4  }
 0x252   :  { %18 = sbr.rel (!%p16_p4) target bundleno = 1 (0x1), region = 91 }

</bundles_post_ra>
